<compile_context>
chip_gen: v6e
topology: v6e:2x2x1
jax: 0.10.0
libtpu: 0.0.40
codegen_flags: <defaults>
</compile_context>

<pallas_src>
import functools
import math

import jax
import jax.numpy as jnp
from jax import lax
from jax.experimental import pallas as pl
from jax.experimental.pallas import tpu as pltpu

_LANES = 128
_TILE_ROWS = 2048          # tiled-path block rows (multiple of 32; 1 MiB f32 block)
_CHUNK_ROWS = 256          # in-kernel streaming chunk (multiple of 32)
_FAST_PATH_MAX_ROWS = 2048  # <= 1 MiB per f32 input -> single-block fast path


def _num_tc_splits():
    """2-way 'parallel' split only on parts with 2 TensorCores per chip."""
    try:
        kind = jax.devices()[0].device_kind.lower()
    except Exception:
        return 1
    return 2 if any(v in kind for v in ("v7", "v5p", "v4")) else 1


# ----------------------------------------------------------------------------
# Fast path: whole arrays fit in VMEM -> single invocation, scalar outputs.
# ----------------------------------------------------------------------------
def _disc_loss_small_kernel(real_ref, fake_ref, lf_ref, lr_ref, ld_ref, *, inv_n):
    real = real_ref[...].astype(jnp.float32)
    fake = fake_ref[...].astype(jnp.float32)

    # torch.nn.BCELoss clamps each log term at -100.
    log_real = jnp.maximum(jnp.log(real), -100.0)        # target = 1
    log_fake = jnp.maximum(jnp.log(1.0 - fake), -100.0)  # target = 0

    # Full reduce in-kernel: sublane reduce then lane reduce (XLU), keepdims
    # so the result is a (1, 1) tile written straight to the scalar outputs.
    sum_real = jnp.sum(jnp.sum(log_real, axis=0, keepdims=True), axis=1, keepdims=True)
    sum_fake = jnp.sum(jnp.sum(log_fake, axis=0, keepdims=True), axis=1, keepdims=True)

    loss_real = sum_real * (-inv_n)
    loss_fake = sum_fake * (-inv_n)
    lf_ref[...] = loss_fake
    lr_ref[...] = loss_real
    ld_ref[...] = 0.5 * (loss_fake + loss_real)


# ----------------------------------------------------------------------------
# Tiled path: streaming HBM-bound reduction for large inputs.
# ----------------------------------------------------------------------------
def _disc_loss_tiled_kernel(real_ref, fake_ref, sum_real_ref, sum_fake_ref,
                            acc_real_ref, acc_fake_ref, *,
                            tile_rows, tiles_per_split, rows):
    c = pl.program_id(0)
    t = pl.program_id(1)

    @pl.when(t == 0)
    def _init():
        acc_real_ref[...] = jnp.zeros_like(acc_real_ref)
        acc_fake_ref[...] = jnp.zeros_like(acc_fake_ref)

    row0 = (c * tiles_per_split + t) * tile_rows   # first global row of this tile
    rows_left = rows - row0                        # scalar; <= 0 for overrun tiles
    is_full = rows_left >= tile_rows

    @pl.when(is_full)
    def _full_tile():
        # No mask at all on full tiles. Stream the tile in small chunks so the
        # live set stays at a few vregs (no full-tile f32 VMEM temp).
        def body(i, carry):
            r0 = pl.multiple_of(i * _CHUNK_ROWS, _CHUNK_ROWS)
            r = real_ref[pl.ds(r0, _CHUNK_ROWS), :].astype(jnp.float32)
            f = fake_ref[pl.ds(r0, _CHUNK_ROWS), :].astype(jnp.float32)
            lr_ = jnp.maximum(jnp.log(r), -100.0)
            lf_ = jnp.maximum(jnp.log(1.0 - f), -100.0)
            acc_real_ref[...] += jnp.sum(
                lr_.reshape(_CHUNK_ROWS // 8, 8, _LANES), axis=0)
            acc_fake_ref[...] += jnp.sum(
                lf_.reshape(_CHUNK_ROWS // 8, 8, _LANES), axis=0)
            return carry

        lax.fori_loop(0, tile_rows // _CHUNK_ROWS, body, 0)

    @pl.when(jnp.logical_not(is_full))
    def _partial_tile():
        # At most one partial (or overrun) tile per split. Neutralize invalid
        # rows BEFORE the log (real->1.0, fake->0.0 contribute exactly 0), so
        # undefined data in the truncated edge block never produces NaN/Inf.
        # Grid-varying part of the mask is only the scalar `rows_left`.
        row_i = lax.broadcasted_iota(jnp.int32, (tile_rows, _LANES), 0)
        valid = row_i < rows_left
        r = jnp.where(valid, real_ref[...].astype(jnp.float32), 1.0)
        f = jnp.where(valid, fake_ref[...].astype(jnp.float32), 0.0)
        lr_ = jnp.maximum(jnp.log(r), -100.0)
        lf_ = jnp.maximum(jnp.log(1.0 - f), -100.0)
        acc_real_ref[...] += jnp.sum(lr_.reshape(tile_rows // 8, 8, _LANES), axis=0)
        acc_fake_ref[...] += jnp.sum(lf_.reshape(tile_rows // 8, 8, _LANES), axis=0)

    @pl.when(t == tiles_per_split - 1)
    def _finalize():
        # Fold the final cross-lane/sublane reduce into the kernel (idle XLU);
        # only a per-split scalar leaves the kernel.
        sum_real_ref[...] = jnp.sum(
            jnp.sum(acc_real_ref[...], axis=0, keepdims=True), axis=1, keepdims=True)
        sum_fake_ref[...] = jnp.sum(
            jnp.sum(acc_fake_ref[...], axis=0, keepdims=True), axis=1, keepdims=True)


# ----------------------------------------------------------------------------
# Wrapper
# ----------------------------------------------------------------------------
def _as_rows_lanes(x, pad_value):
    """Flatten to (rows, 128), lane-padding with a NEUTRAL value.

    Free (no copy) when numel % 128 == 0, the common case. Neutral padding
    (real -> 1.0, fake -> 0.0) makes padded elements contribute exactly 0 to
    the BCE sums, so no mask is needed for them. Native dtype is preserved.
    """
    flat = x.reshape(-1)
    rem = flat.shape[0] % _LANES
    if rem:
        flat = jnp.pad(flat, (0, _LANES - rem), constant_values=pad_value)
    return flat.reshape(-1, _LANES)


def discriminator_loss(pred_real, pred_fake):
    """Returns (loss_fake, loss_real, loss_discriminator) as f32 scalars."""
    n_valid = math.prod(pred_real.shape)
    assert math.prod(pred_fake.shape) == n_valid, \
        "pred_real / pred_fake must have equal sizes"
    inv_n = 1.0 / float(n_valid)

    real2d = _as_rows_lanes(pred_real, 1.0)   # neutral for target = 1
    fake2d = _as_rows_lanes(pred_fake, 0.0)   # neutral for target = 0
    rows = real2d.shape[0]

    # ---------------- Fast path: single block, scalars produced in-kernel ----
    if rows <= _FAST_PATH_MAX_ROWS:
        lf, lr, ld = pl.pallas_call(
            functools.partial(_disc_loss_small_kernel, inv_n=inv_n),
            out_shape=(
                jax.ShapeDtypeStruct((1, 1), jnp.float32),
                jax.ShapeDtypeStruct((1, 1), jnp.float32),
                jax.ShapeDtypeStruct((1, 1), jnp.float32),
            ),
        )(real2d, fake2d)
        return lf[0, 0], lr[0, 0], ld[0, 0]

    # ---------------- Tiled path: pipelined streaming reduction --------------
    tile_rows = _TILE_ROWS                                  # rows > tile_rows here
    num_tiles = (rows + tile_rows - 1) // tile_rows
    n_splits = _num_tc_splits() if num_tiles >= 2 else 1    # 2 only on 2-TC chips
    tiles_per_split = (num_tiles + n_splits - 1) // n_splits

    def in_index_map(c, t):
        # Overrun grid points (odd num_tiles with a 2-way split) are clamped to
        # the last real tile; their contribution is zeroed by the partial branch.
        return (jnp.minimum(c * tiles_per_split + t, num_tiles - 1), 0)

    kernel = functools.partial(
        _disc_loss_tiled_kernel,
        tile_rows=tile_rows,
        tiles_per_split=tiles_per_split,
        rows=rows,
    )

    sums_real, sums_fake = pl.pallas_call(
        kernel,
        out_shape=(
            jax.ShapeDtypeStruct((n_splits, 1, 1), jnp.float32),
            jax.ShapeDtypeStruct((n_splits, 1, 1), jnp.float32),
        ),
        grid=(n_splits, tiles_per_split),
        in_specs=[
            pl.BlockSpec((tile_rows, _LANES), in_index_map),
            pl.BlockSpec((tile_rows, _LANES), in_index_map),
        ],
        out_specs=(
            pl.BlockSpec((None, 1, 1), lambda c, t: (c, 0, 0)),
            pl.BlockSpec((None, 1, 1), lambda c, t: (c, 0, 0)),
        ),
        scratch_shapes=[
            pltpu.VMEM((8, _LANES), jnp.float32),   # acc_real (persists over t)
            pltpu.VMEM((8, _LANES), jnp.float32),   # acc_fake
        ],
        compiler_params=pltpu.CompilerParams(
            dimension_semantics=("parallel", "arbitrary")),
    )(real2d, fake2d)

    # Tiny epilogue: sum over n_splits (<= 2) scalars + compile-time 1/N scale.
    loss_real = -jnp.sum(sums_real) * inv_n
    loss_fake = -jnp.sum(sums_fake) * inv_n
    loss_disc = 0.5 * (loss_fake + loss_real)
    return loss_fake, loss_real, loss_disc


def _reference(pred_real, pred_fake):
    # Plain-JAX reference mirroring torch.nn.BCELoss semantics.
    pr = pred_real.astype(jnp.float32)
    pf = pred_fake.astype(jnp.float32)
    loss_real = jnp.mean(-jnp.maximum(jnp.log(pr), -100.0))
    loss_fake = jnp.mean(-jnp.maximum(jnp.log(1.0 - pf), -100.0))
    return loss_fake, loss_real, 0.5 * (loss_fake + loss_real)


if __name__ == "__main__":
    key = jax.random.PRNGKey(0)

    test_cases = [
        ((2, 4, 16, 16), jnp.float32),     # canonical small case -> fast path
        ((3, 1, 30, 37), jnp.float32),     # numel % 128 != 0 -> neutral lane padding
        ((8, 1, 320, 320), jnp.bfloat16),  # large -> tiled path (full + partial tiles)
    ]

    for shape, dtype in test_cases:
        key, k1, k2 = jax.random.split(key, 3)
        pred_real = jax.nn.sigmoid(
            jax.random.normal(k1, shape, dtype=jnp.float32)).astype(dtype)
        pred_fake = jax.nn.sigmoid(
            jax.random.normal(k2, shape, dtype=jnp.float32)).astype(dtype)

        lf, lr, ld = discriminator_loss(pred_real, pred_fake)
        jax.block_until_ready((lf, lr, ld))

        rf, rr, rd = _reference(pred_real, pred_fake)
        assert jnp.allclose(lf, rf, rtol=1e-4, atol=1e-6), (shape, lf, rf)
        assert jnp.allclose(lr, rr, rtol=1e-4, atol=1e-6), (shape, lr, rr)
        assert jnp.allclose(ld, rd, rtol=1e-4, atol=1e-6), (shape, ld, rd)

    print("KERNEL_OK")
</pallas_src>

<mosaic_0001>
module attributes {stable_mosaic.version = 11 : i64} {
  func.func @_disc_loss_small_kernel(%arg0: memref<16x128xf32, #tpu.memory_space<vmem>>, %arg1: memref<16x128xf32, #tpu.memory_space<vmem>>, %arg2: memref<1x1xf32, #tpu.memory_space<vmem>>, %arg3: memref<1x1xf32, #tpu.memory_space<vmem>>, %arg4: memref<1x1xf32, #tpu.memory_space<vmem>>) attributes {dimension_semantics = [], scalar_prefetch = 0 : i64, scratch_operands = 0 : i64, tpu.core_type = #tpu.core_type<tc>} {
    %c0 = arith.constant 0 : index
    %c0_0 = arith.constant 0 : index
    %0 = vector.load %arg0[%c0, %c0_0] : memref<16x128xf32, #tpu.memory_space<vmem>>, vector<16x128xf32>
    %c0_1 = arith.constant 0 : index
    %c0_2 = arith.constant 0 : index
    %1 = vector.load %arg1[%c0_1, %c0_2] : memref<16x128xf32, #tpu.memory_space<vmem>>, vector<16x128xf32>
    %2 = math.log %0 : vector<16x128xf32>
    %cst = arith.constant -1.000000e+02 : f32
    %3 = vector.broadcast %cst : f32 to vector<16x128xf32>
    %4 = arith.maximumf %2, %3 : vector<16x128xf32>
    %cst_3 = arith.constant 1.000000e+00 : f32
    %5 = vector.broadcast %cst_3 : f32 to vector<16x128xf32>
    %6 = arith.subf %5, %1 : vector<16x128xf32>
    %7 = math.log %6 : vector<16x128xf32>
    %cst_4 = arith.constant -1.000000e+02 : f32
    %8 = vector.broadcast %cst_4 : f32 to vector<16x128xf32>
    %9 = arith.maximumf %7, %8 : vector<16x128xf32>
    %cst_5 = arith.constant dense<0.000000e+00> : vector<128xf32>
    %10 = vector.multi_reduction <add>, %4, %cst_5 [0] : vector<16x128xf32> to vector<128xf32>
    %11 = vector.shape_cast %10 : vector<128xf32> to vector<1x128xf32>
    %cst_6 = arith.constant dense<0.000000e+00> : vector<1xf32>
    %12 = vector.multi_reduction <add>, %11, %cst_6 [1] : vector<1x128xf32> to vector<1xf32>
    %13 = vector.shape_cast %12 : vector<1xf32> to vector<1x1xf32>
    %cst_7 = arith.constant dense<0.000000e+00> : vector<128xf32>
    %14 = vector.multi_reduction <add>, %9, %cst_7 [0] : vector<16x128xf32> to vector<128xf32>
    %15 = vector.shape_cast %14 : vector<128xf32> to vector<1x128xf32>
    %cst_8 = arith.constant dense<0.000000e+00> : vector<1xf32>
    %16 = vector.multi_reduction <add>, %15, %cst_8 [1] : vector<1x128xf32> to vector<1xf32>
    %17 = vector.shape_cast %16 : vector<1xf32> to vector<1x1xf32>
    %cst_9 = arith.constant -4.8828125E-4 : f32
    %18 = vector.broadcast %cst_9 : f32 to vector<1x1xf32>
    %19 = arith.mulf %13, %18 : vector<1x1xf32>
    %cst_10 = arith.constant -4.8828125E-4 : f32
    %20 = vector.broadcast %cst_10 : f32 to vector<1x1xf32>
    %21 = arith.mulf %17, %20 : vector<1x1xf32>
    %c0_11 = arith.constant 0 : index
    %c0_12 = arith.constant 0 : index
    %22 = vector.load %arg2[%c0_11, %c0_12] : memref<1x1xf32, #tpu.memory_space<vmem>>, vector<1x1xf32>
    tpu.vector_store %arg2[%c0_11, %c0_12], %21 {strides = array<i32>} : memref<1x1xf32, #tpu.memory_space<vmem>>, vector<1x1xf32>,
    %c0_13 = arith.constant 0 : index
    %c0_14 = arith.constant 0 : index
    %23 = vector.load %arg3[%c0_13, %c0_14] : memref<1x1xf32, #tpu.memory_space<vmem>>, vector<1x1xf32>
    tpu.vector_store %arg3[%c0_13, %c0_14], %19 {strides = array<i32>} : memref<1x1xf32, #tpu.memory_space<vmem>>, vector<1x1xf32>,
    %24 = arith.addf %21, %19 : vector<1x1xf32>
    %cst_15 = arith.constant 5.000000e-01 : f32
    %25 = vector.broadcast %cst_15 : f32 to vector<1x1xf32>
    %26 = arith.mulf %25, %24 : vector<1x1xf32>
    %c0_16 = arith.constant 0 : index
    %c0_17 = arith.constant 0 : index
    %27 = vector.load %arg4[%c0_16, %c0_17] : memref<1x1xf32, #tpu.memory_space<vmem>>, vector<1x1xf32>
    tpu.vector_store %arg4[%c0_16, %c0_17], %26 {strides = array<i32>} : memref<1x1xf32, #tpu.memory_space<vmem>>, vector<1x1xf32>,
    return
  }
}

</mosaic_0001>

<bundles_post_ra>
// kernel: tpu_custom_call.1
= control target key start
LH: loop header
LB: loop body
LE: loop exit
PB: predicated region body
PF: predicated region fallthrough
CT: control target
= control target key end

     0   :  { %10 = vsyncpa [#allocation3], 0  ;;  %s304_s0 = inlined_call_operand.hbm [shape: f32[16,128], index: 0, kind: input, shape index: {}]   ;;  %s305_s1 = inlined_call_operand.hbm [shape: f32[16,128], index: 1, kind: input, shape index: {}]   ;;  %s306_s2 = inlined_call_operand.hbm [shape: f32[1,1], index: 2, kind: output, shape index: {0}]   ;;  %s307_s3 = inlined_call_operand.hbm [shape: f32[1,1], index: 3, kind: output, shape index: {1}]   ;;  %s308_s4 = inlined_call_operand.hbm [shape: f32[1,1], index: 4, kind: output, shape index: {2}]  }
   0x1   :  { %11 = vsyncpa [#allocation6], 0 }
   0x2   :  { %12 = vsyncpa [#allocation4], 0 }
   0x3   :  { %13 = vsyncpa [#allocation9], 0  ;;  %s254_s15 = smov [#allocation2]  }
   0x4   :  { %s19_s16 = sshll.u32 %s254_s15, 4  ;;  %s20_s16 = int_to_ptr.vmem [resolvable:$true] %s19_s16 }
   0x5   :  { %s154_s17 = scalar_lea.vmem %s20_s16, 256  ;;  %p159_p1 = scmp.lt.s32.totalorder %s20_s16, %s20_s16 }
   0x6   :  { %p155_p0 = scmp.ne.s32.totalorder %s20_s16, %s154_s17  ;;  %p160_p2 = scmp.lt.s32.totalorder %s154_s17, %s154_s17 }
   0x8   :  { %p161_p3 = por %p160_p2, %p159_p1 }
   0xa   :  { %p162_p4 = pnand %p161_p3, %p155_p0 }
   0xc   :  { %165 = shalt.err (!%p162_p4)
}
   0xd   :  { %s255_s18 = smov 128   ;;  %s256_s19 = smov 8  }
   0xe   :  { %25 = dma.hbm_to_vmem [thread:$0]  %s304_s0, 256, %s20_s16, [#allocation3], %s255_s18, %s255_s18, %s256_s19  }
   0xf   :  { %s257_s22 = smov [#allocation5]  }
  0x10   :  { %s31_s23 = sshll.u32 %s257_s22, 4  ;;  %s32_s23 = int_to_ptr.vmem [resolvable:$true] %s31_s23 }
  0x11   :  { %s174_s24 = scalar_lea.vmem %s32_s23, 256  ;;  %p179_p6 = scmp.lt.s32.totalorder %s32_s23, %s32_s23 }
  0x12   :  { %p175_p5 = scmp.ne.s32.totalorder %s32_s23, %s174_s24  ;;  %p180_p7 = scmp.lt.s32.totalorder %s174_s24, %s174_s24 }
  0x14   :  { %p181_p8 = por %p180_p7, %p179_p6 }
  0x16   :  { %p182_p9 = pnand %p181_p8, %p175_p5 }
  0x18   :  { %185 = shalt.err (!%p182_p9)
}
  0x19   :  { %37 = dma.hbm_to_vmem [thread:$0]  %s305_s1, 256, %s32_s23, [#allocation6], %s255_s18, %s255_s18, %s256_s19  }
  0x1a   :  { %246 = dma.done.wait [#allocation3], 256  }
  0x1b   :  { %247 = vsyncadd [#allocation3], 4294967040 }
  0x1c   :  { %248 = dma.done.wait [#allocation6], 256  }
  0x1d   :  { %249 = vsyncadd [#allocation6], 4294967040  ;;  %v44_v0 = vld [vmem:[#allocation2] sm:$0xff]  ;;  %v45_v1 = vld [vmem:[#allocation2 + $0x8] sm:$0xff]  ;;  %s258_s0 = smov [#allocation8]   ;;  %vm82_vm0 = vcmask 0  }
  0x1e   :  { %v46_v2 = vld [vmem:[#allocation5] sm:$0xff]  ;;  %138 = vlog2.f32 %v44_v0  ;;  %v47_v3 = vld [vmem:[#allocation5 + $0x8] sm:$0xff]  ;;  %s104_s1 = sshll.u32 %s258_s0, 4  ;;  %s259_s27 = smov [#allocation7]   ;;  %s105_s1 = int_to_ptr.vmem [resolvable:$true] %s104_s1 }
  0x1f   :  { %v54_v4 = vsub.f32 1.0, %v46_v2  ;;  %140 = vlog2.f32 %v45_v1  ;;  %v55_v5 = vsub.f32 1.0, %v47_v3  ;;  %s94_s28 = sshll.u32 %s259_s27, 4  ;;  %s186_s29 = scalar_lea.vmem %s105_s1, 16  ;;  %s95_s28 = int_to_ptr.vmem [resolvable:$true] %s94_s28 }
  0x20   :  { %p187_p10 = scmp.ne.s32.totalorder %s105_s1, %s186_s29  ;;  %s190_s30 = scalar_lea.vmem %s105_s1, 32 }
  0x21   :  { %142 = vlog2.f32 %v54_v4  ;;  %p191_p11 = scmp.lt.s32.totalorder %s105_s1, %s105_s1  ;;  %p192_p12 = scmp.lt.s32.totalorder %s190_s30, %s186_s29 }
  0x22   :  { %144 = vlog2.f32 %v55_v5 }
  0x23   :  { %p193_p13 = por %p192_p12, %p191_p11 }
  0x25   :  { %p194_p0 = pnand %p193_p13, %p187_p10 }
  0x2b   :  { %v139_v6 = vpop.eup %138 }
  0x2c   :  { %v141_v7 = vpop.eup %140  ;;  %v49_v8 = vmul.f32 0.6931472, %v139_v6 }
  0x2d   :  { %v51_v10 = vmul.f32 0.6931472, %v141_v7 }
  0x2e   :  { %v143_v9 = vpop.eup %142  ;;  %v52_v12 = vmax.f32 %v49_v8, -100.0 }
  0x2f   :  { %v145_v11 = vpop.eup %144  ;;  %v57_v13 = vmul.f32 0.6931472, %v143_v9  ;;  %v53_v14 = vmax.f32 %v51_v10, -100.0 }
  0x30   :  { %v59_v15 = vmul.f32 0.6931472, %v145_v11 }
  0x31   :  { %v60_v16 = vmax.f32 %v57_v13, -100.0  ;;  %v62_v17 = vadd.f32 %v53_v14, %v52_v12 }
  0x32   :  { %v61_v18 = vmax.f32 %v59_v15, -100.0 }
  0x33   :  { %v63_v19 = vrot.slane %v62_v17, 4 }
  0x34   :  { %v71_v20 = vadd.f32 %v61_v18, %v60_v16 }
  0x35   :  { %v64_v21 = vadd.f32 %v63_v19, %v62_v17 }
  0x36   :  { %v72_v22 = vrot.slane %v71_v20, 4 }
  0x37   :  { %v65_v23 = vrot.slane %v64_v21, 2 }
  0x38   :  { %v73_v24 = vadd.f32 %v72_v22, %v71_v20 }
  0x39   :  { %v66_v25 = vadd.f32 %v65_v23, %v64_v21 }
  0x3a   :  { %v74_v26 = vrot.slane %v73_v24, 2 }
  0x3b   :  { %v67_v27 = vrot.slane %v66_v25, 1 }
  0x3c   :  { %v75_v28 = vadd.f32 %v74_v26, %v73_v24 }
  0x3d   :  { %v68_v29 = vadd.f32 %v67_v27, %v66_v25 }
  0x3e   :  { %v76_v30 = vrot.slane %v75_v28, 1 }
  0x3f   :  { %69 = vadd.xlane.f32.xlu0 %v68_v29 }
  0x40   :  { %v77_v31 = vadd.f32 %v76_v30, %v75_v28 }
  0x43   :  { %78 = vadd.xlane.f32.xlu0 %v77_v31 }
  0xc8   :  { %v70_v32 = vpop.xlane.xlu0 %69 }
  0xc9   :  { %v80_v33 = vmul.f32 -0.00048828125, %v70_v32 }
  0xcb   :  { %84 = vst.msk [vmem:[#allocation8] sm:$0x1] %vm82_vm0, %v80_v33 }
  0xcc   :  { %v79_v34 = vpop.xlane.xlu0 %78 }
  0xcd   :  { %197 = shalt.err (!%p194_p0)
}
  0xce   :  { %107 = dma.vmem_to_hbm [thread:$0]  %s105_s1, 16, %s307_s3, [#allocation9]   ;;  %v81_v35 = vmul.f32 -0.00048828125, %v79_v34 }
  0xcf   :  { %s260_s7 = smov [#allocation10]   ;;  %s206_s9 = scalar_lea.vmem %s95_s28, 16 }
  0xd0   :  { %s114_s8 = sshll.u32 %s260_s7, 4  ;;  %v85_v36 = vadd.f32 %v81_v35, %v80_v33  ;;  %83 = vst.msk [vmem:[#allocation7] sm:$0x1] %vm82_vm0, %v81_v35  ;;  %p207_p1 = scmp.ne.s32.totalorder %s95_s28, %s206_s9  ;;  %s115_s8 = int_to_ptr.vmem [resolvable:$true] %s114_s8 }
  0xd1   :  { %s210_s10 = scalar_lea.vmem %s95_s28, 32  ;;  %p211_p2 = scmp.lt.s32.totalorder %s95_s28, %s95_s28 }
  0xd2   :  { %p212_p3 = scmp.lt.s32.totalorder %s210_s10, %s206_s9 }
  0xd4   :  { %p213_p4 = por %p212_p3, %p211_p2 }
  0xd6   :  { %p214_p5 = pnand %p213_p4, %p207_p1 }
  0xd8   :  { %217 = shalt.err (!%p214_p5)
}
  0xd9   :  { %97 = dma.vmem_to_hbm [thread:$0]  %s95_s28, 16, %s306_s2, [#allocation4]   ;;  %v86_v37 = vmul.f32 0.5, %v85_v36 }
  0xda   :  { %s226_s3 = scalar_lea.vmem %s115_s8, 16  ;;  %s230_s13 = scalar_lea.vmem %s115_s8, 32 }
  0xdb   :  { %87 = vst.msk [vmem:[#allocation10] sm:$0x1] %vm82_vm0, %v86_v37  ;;  %p227_p6 = scmp.ne.s32.totalorder %s115_s8, %s226_s3  ;;  %p231_p7 = scmp.lt.s32.totalorder %s115_s8, %s115_s8 }
  0xdc   :  { %p232_p8 = scmp.lt.s32.totalorder %s230_s13, %s226_s3 }
  0xde   :  { %p233_p9 = por %p232_p8, %p231_p7 }
  0xe0   :  { %p234_p10 = pnand %p233_p9, %p227_p6 }
  0xe2   :  { %237 = shalt.err (!%p234_p10)
}
  0xe3   :  { %117 = dma.vmem_to_hbm [thread:$0]  %s115_s8, 16, %s308_s4, [#allocation9]  }
  0xe4   :  { %250 = dma.done.wait [#allocation4], 16  }
  0xe5   :  { %251 = vsyncadd [#allocation4], 4294967280 }
  0xe6   :  { %252 = dma.done.wait [#allocation9], 32  }
  0xe7   :  { %253 = vsyncadd [#allocation9], 4294967264 }
  0xe8   :  { %127 = vsyncpa [#allocation3], 1 }
  0xe9   :  { %128 = vsyncpa [#allocation6], 1 }
  0xea   :  { %129 = vsyncpa [#allocation4], 1 }
  0xeb   :  { %130 = vsyncpa [#allocation9], 1 }

</bundles_post_ra>
